<compile_context>
chip_gen: v5e
topology: v5e:2x2
jax: 0.10.0
libtpu: 0.0.40
codegen_flags: <defaults>
</compile_context>

<pallas_src>
import jax
import jax.numpy as jnp
from jax.experimental import pallas as pl
from jax.experimental.pallas import tpu as pltpu

DIM = 8                 # input feature dim ("dim" of the high-dim Poisson problem)
HIDDEN = 32             # hidden width of the GCN
H1 = HIDDEN - DIM       # 24 = output width of conv1 / conv2
LANE = 128              # TPU lane width; all lane dims padded to this

# Packed parameter slab layout ([SLAB_ROWS, 128] f32, zero padded everywhere else):
#   [  0:128)  W1   rows 0..DIM-1 , cols 0..H1-1
#   [128:256)  W2h  rows 0..H1-1  , cols 0..H1-1   (W2[:H1, :])
#   [256:384)  W2x  rows 0..DIM-1 , cols 0..H1-1   (W2[H1:, :])
#   [384:512)  W3h  rows 0..H1-1  , col  0         (W3[:H1, :])
#   [512:640)  W3x  rows 0..DIM-1 , col  0         (W3[H1:, :])
#   [640:648)  biases: row 640 = b1, row 641 = b2, row 642 = b3
SLAB_ROWS = 5 * LANE + 8   # 648


# ----------------------------- Pallas kernel --------------------------------
def gcn_skip_kernel(a_ref, x_ref, w_ref, out_ref):
    """Fused 3-layer GCN (skip connections folded into split weights).

    a_ref  : [NP, NP]  bf16  zero-padded normalized adjacency D^-1/2 (A+I) D^-1/2
    x_ref  : [NP, 128] f32   node features in lanes [0, DIM), zeros elsewhere
    w_ref  : [648, 128] f32  packed parameter slab (layout above)
    out_ref: [NP, 128] f32   result in lane 0, exact zeros in the other lanes
    """
    f32 = jnp.float32
    bf16 = jnp.bfloat16

    a = a_ref[...]                       # bf16 MXU operand, loaded once
    x = x_ref[...].astype(bf16)          # bf16 MXU operand (only used in matmuls)

    # Static, tile-aligned slices of the parameter slab; cast weights to bf16 for
    # the MXU. Zero-padded rows/cols make the concat->split identity exact.
    w1  = w_ref[0:128, :].astype(bf16)
    w2h = w_ref[128:256, :].astype(bf16)
    w2x = w_ref[256:384, :].astype(bf16)
    w3h = w_ref[384:512, :].astype(bf16)
    w3x = w_ref[512:640, :].astype(bf16)
    btail = w_ref[640:648, :]            # f32 biases (aligned 8-row load)
    b1 = btail[0:1, :]
    b2 = btail[1:2, :]
    b3 = btail[2:3, :]

    # conv1:  h1 = relu(A @ (x @ W1) + b1)
    z1 = jnp.dot(x, w1, preferred_element_type=f32)
    h1 = jnp.maximum(
        jnp.dot(a, z1.astype(bf16), preferred_element_type=f32) + b1, 0.0)

    # conv2 + skip:  cat([h1, x]) @ W2 == h1 @ W2h + x @ W2x   (no concat / XLU)
    z2 = (jnp.dot(h1.astype(bf16), w2h, preferred_element_type=f32)
          + jnp.dot(x, w2x, preferred_element_type=f32))
    h2 = jnp.maximum(
        jnp.dot(a, z2.astype(bf16), preferred_element_type=f32) + b2, 0.0)

    # conv3 + skip (no activation)
    z3 = (jnp.dot(h2.astype(bf16), w3h, preferred_element_type=f32)
          + jnp.dot(x, w3x, preferred_element_type=f32))
    y = jnp.dot(a, z3.astype(bf16), preferred_element_type=f32) + b3

    out_ref[...] = y                     # unmasked 128-lane store


# ------------------------------- wrapper -------------------------------------
def pack_params(params):
    """Pack (w1,b1,w2,b2,w3,b3) into one zero-padded [648, 128] f32 slab."""
    w1, b1, w2, b2, w3, b3 = params
    slab = jnp.zeros((SLAB_ROWS, LANE), jnp.float32)
    slab = slab.at[0:DIM, 0:H1].set(w1)                       # W1
    slab = slab.at[LANE:LANE + H1, 0:H1].set(w2[:H1])         # W2h
    slab = slab.at[2 * LANE:2 * LANE + DIM, 0:H1].set(w2[H1:])  # W2x
    slab = slab.at[3 * LANE:3 * LANE + H1, 0:1].set(w3[:H1])  # W3h
    slab = slab.at[4 * LANE:4 * LANE + DIM, 0:1].set(w3[H1:])  # W3x
    slab = slab.at[5 * LANE, 0:H1].set(b1.reshape(-1))        # b1
    slab = slab.at[5 * LANE + 1, 0:H1].set(b2.reshape(-1))    # b2
    slab = slab.at[5 * LANE + 2, 0:1].set(b3.reshape(-1))     # b3
    return slab


def net_skip_forward(x, a_hat, params):
    """x: [N, DIM] f32, a_hat: [N, N] f32, params: (w1,b1,w2,b2,w3,b3) -> [N, 1]."""
    n = x.shape[0]
    n_pad = ((n + LANE - 1) // LANE) * LANE          # lane-dense node count

    # Lane-dense, zero-padded inputs; padded A rows/cols are zero so padded-row
    # garbage never leaks into valid rows.  A is shipped as bf16 (MXU-native).
    x_pad = jnp.zeros((n_pad, LANE), jnp.float32).at[:n, :DIM].set(x)
    a_pad = (jnp.zeros((n_pad, n_pad), jnp.float32)
             .at[:n, :n].set(a_hat).astype(jnp.bfloat16))
    slab = pack_params(params)

    vmem = pl.BlockSpec(memory_space=pltpu.MemorySpace.VMEM)
    out = pl.pallas_call(
        gcn_skip_kernel,
        out_shape=jax.ShapeDtypeStruct((n_pad, LANE), jnp.float32),
        in_specs=[vmem, vmem, vmem],
        out_specs=vmem,
    )(a_pad, x_pad, slab)
    return out[:n, :1]


# ------------------------------- JAX glue ------------------------------------
def gcn_norm_dense(edge_index, num_nodes):
    """Dense D^{-1/2} (A + I) D^{-1/2} matching torch_geometric's gcn_norm."""
    src, dst = edge_index[0], edge_index[1]          # messages flow src -> dst
    a = jnp.zeros((num_nodes, num_nodes), jnp.float32)
    a = a.at[dst, src].add(1.0)                      # A[i, j] = 1 iff edge j->i
    a = a + jnp.eye(num_nodes, dtype=jnp.float32)    # add self-loops
    deg = a.sum(axis=1)
    dinv = jnp.where(deg > 0, 1.0 / jnp.sqrt(deg), 0.0)
    return a * dinv[:, None] * dinv[None, :]


def glorot(key, shape):
    fan_in, fan_out = shape
    limit = jnp.sqrt(6.0 / (fan_in + fan_out))
    return jax.random.uniform(key, shape, jnp.float32, -limit, limit)


def init_params(key):
    k1, k2, k3 = jax.random.split(key, 3)
    w1 = glorot(k1, (DIM, H1))                       # conv1: dim -> 32-dim
    b1 = jnp.zeros((1, H1), jnp.float32)
    w2 = glorot(k2, (HIDDEN, H1))                    # conv2: 32 -> 32-dim
    b2 = jnp.zeros((1, H1), jnp.float32)
    w3 = glorot(k3, (HIDDEN, 1))                     # conv3: 32 -> 1
    b3 = jnp.zeros((1, 1), jnp.float32)
    return (w1, b1, w2, b2, w3, b3)


def reference_forward(x, a_hat, params):
    """Pure-JAX f32 reference (exact PyTorch semantics)."""
    w1, b1, w2, b2, w3, b3 = params
    h = jnp.maximum(a_hat @ (x @ w1) + b1, 0.0)
    h = jnp.concatenate([h, x], axis=1)
    h = jnp.maximum(a_hat @ (h @ w2) + b2, 0.0)
    h = jnp.concatenate([h, x], axis=1)
    return a_hat @ (h @ w3) + b3


def reference_forward_bf16(x, a_hat, params):
    """Pure-JAX reference with the same bf16-operand / f32-accumulate numerics."""
    w1, b1, w2, b2, w3, b3 = params
    bf, f32 = jnp.bfloat16, jnp.float32

    def mm(p, q):
        return jnp.dot(p.astype(bf), q.astype(bf), preferred_element_type=f32)

    a = a_hat
    h = jnp.maximum(mm(a, mm(x, w1)) + b1, 0.0)
    h = jnp.maximum(mm(a, mm(h, w2[:H1]) + mm(x, w2[H1:])) + b2, 0.0)
    return mm(a, mm(h, w3[:H1]) + mm(x, w3[H1:])) + b3


# --------------------------------- main ---------------------------------------
if __name__ == "__main__":
    key = jax.random.PRNGKey(0)
    k_x, k_p = jax.random.split(key)

    N = 64  # number of graph nodes (small, deterministic example)

    # Deterministic undirected ring graph (edges in both directions).
    nodes = jnp.arange(N, dtype=jnp.int32)
    src = jnp.concatenate([nodes, (nodes + 1) % N])
    dst = jnp.concatenate([(nodes + 1) % N, nodes])
    edge_index = jnp.stack([src, dst])               # [2, 2N]

    x = jax.random.normal(k_x, (N, DIM), jnp.float32)
    params = init_params(k_p)
    a_hat = gcn_norm_dense(edge_index, N)

    out = net_skip_forward(x, a_hat, params)
    out = jax.block_until_ready(out)

    assert out.shape == (N, 1)
    # Exact-semantics check against a reference with identical bf16/f32 numerics.
    ref_bf = reference_forward_bf16(x, a_hat, params)
    assert jnp.allclose(out, ref_bf, rtol=2e-3, atol=2e-3), "mismatch vs bf16-matched reference"
    # Looser check against the pure-f32 reference (bf16 MXU operand quantization).
    ref32 = reference_forward(x, a_hat, params)
    assert jnp.allclose(out, ref32, rtol=3e-2, atol=3e-2), "mismatch vs f32 reference"

    print("KERNEL_OK")
</pallas_src>

<mosaic_0001>
module attributes {stable_mosaic.version = 11 : i64} {
  func.func @gcn_skip_kernel(%arg0: memref<128x128xbf16, #tpu.memory_space<vmem>>, %arg1: memref<128x128xf32, #tpu.memory_space<vmem>>, %arg2: memref<648x128xf32, #tpu.memory_space<vmem>>, %arg3: memref<128x128xf32, #tpu.memory_space<vmem>>) attributes {dimension_semantics = [], scalar_prefetch = 0 : i64, scratch_operands = 0 : i64, tpu.core_type = #tpu.core_type<tc>} {
    %c0 = arith.constant 0 : index
    %c0_0 = arith.constant 0 : index
    %0 = vector.load %arg0[%c0, %c0_0] : memref<128x128xbf16, #tpu.memory_space<vmem>>, vector<128x128xbf16>
    %c0_1 = arith.constant 0 : index
    %c0_2 = arith.constant 0 : index
    %1 = vector.load %arg1[%c0_1, %c0_2] : memref<128x128xf32, #tpu.memory_space<vmem>>, vector<128x128xf32>
    %2 = arith.truncf %1 : vector<128x128xf32> to vector<128x128xbf16>
    %c0_3 = arith.constant 0 : index
    %c0_4 = arith.constant 0 : index
    %3 = vector.load %arg2[%c0_3, %c0_4] : memref<648x128xf32, #tpu.memory_space<vmem>>, vector<128x128xf32>
    %4 = arith.truncf %3 : vector<128x128xf32> to vector<128x128xbf16>
    %c128 = arith.constant 128 : index
    %c0_5 = arith.constant 0 : index
    %5 = vector.load %arg2[%c128, %c0_5] : memref<648x128xf32, #tpu.memory_space<vmem>>, vector<128x128xf32>
    %6 = arith.truncf %5 : vector<128x128xf32> to vector<128x128xbf16>
    %c256 = arith.constant 256 : index
    %c0_6 = arith.constant 0 : index
    %7 = vector.load %arg2[%c256, %c0_6] : memref<648x128xf32, #tpu.memory_space<vmem>>, vector<128x128xf32>
    %8 = arith.truncf %7 : vector<128x128xf32> to vector<128x128xbf16>
    %c384 = arith.constant 384 : index
    %c0_7 = arith.constant 0 : index
    %9 = vector.load %arg2[%c384, %c0_7] : memref<648x128xf32, #tpu.memory_space<vmem>>, vector<128x128xf32>
    %10 = arith.truncf %9 : vector<128x128xf32> to vector<128x128xbf16>
    %c512 = arith.constant 512 : index
    %c0_8 = arith.constant 0 : index
    %11 = vector.load %arg2[%c512, %c0_8] : memref<648x128xf32, #tpu.memory_space<vmem>>, vector<128x128xf32>
    %12 = arith.truncf %11 : vector<128x128xf32> to vector<128x128xbf16>
    %c640 = arith.constant 640 : index
    %c0_9 = arith.constant 0 : index
    %13 = vector.load %arg2[%c640, %c0_9] : memref<648x128xf32, #tpu.memory_space<vmem>>, vector<8x128xf32>
    %14 = vector.extract_strided_slice %13 {offsets = [0, 0], sizes = [1, 128], strides = [1, 1]} : vector<8x128xf32> to vector<1x128xf32>
    %15 = vector.extract_strided_slice %13 {offsets = [1, 0], sizes = [1, 128], strides = [1, 1]} : vector<8x128xf32> to vector<1x128xf32>
    %16 = vector.extract_strided_slice %13 {offsets = [2, 0], sizes = [1, 128], strides = [1, 1]} : vector<8x128xf32> to vector<1x128xf32>
    %cst = arith.constant dense<0.000000e+00> : vector<128x128xf32>
    %17 = tpu.matmul %2, %4, %cst {dimension_numbers = #tpu.dot_dimension_numbers<[1], [0], [0], [1], [0, 0, 1, 1], [], []>} : vector<128x128xbf16>, vector<128x128xbf16>, vector<128x128xf32> -> vector<128x128xf32>
    %18 = arith.truncf %17 : vector<128x128xf32> to vector<128x128xbf16>
    %cst_10 = arith.constant dense<0.000000e+00> : vector<128x128xf32>
    %19 = tpu.matmul %0, %18, %cst_10 {dimension_numbers = #tpu.dot_dimension_numbers<[1], [0], [0], [1], [0, 0, 1, 1], [], []>} : vector<128x128xbf16>, vector<128x128xbf16>, vector<128x128xf32> -> vector<128x128xf32>
    %20 = vector.broadcast %14 : vector<1x128xf32> to vector<128x128xf32>
    %21 = arith.addf %19, %20 : vector<128x128xf32>
    %cst_11 = arith.constant 0.000000e+00 : f32
    %22 = vector.broadcast %cst_11 : f32 to vector<128x128xf32>
    %23 = arith.maximumf %21, %22 : vector<128x128xf32>
    %24 = arith.truncf %23 : vector<128x128xf32> to vector<128x128xbf16>
    %cst_12 = arith.constant dense<0.000000e+00> : vector<128x128xf32>
    %25 = tpu.matmul %24, %6, %cst_12 {dimension_numbers = #tpu.dot_dimension_numbers<[1], [0], [0], [1], [0, 0, 1, 1], [], []>} : vector<128x128xbf16>, vector<128x128xbf16>, vector<128x128xf32> -> vector<128x128xf32>
    %cst_13 = arith.constant dense<0.000000e+00> : vector<128x128xf32>
    %26 = tpu.matmul %2, %8, %cst_13 {dimension_numbers = #tpu.dot_dimension_numbers<[1], [0], [0], [1], [0, 0, 1, 1], [], []>} : vector<128x128xbf16>, vector<128x128xbf16>, vector<128x128xf32> -> vector<128x128xf32>
    %27 = arith.addf %25, %26 : vector<128x128xf32>
    %28 = arith.truncf %27 : vector<128x128xf32> to vector<128x128xbf16>
    %cst_14 = arith.constant dense<0.000000e+00> : vector<128x128xf32>
    %29 = tpu.matmul %0, %28, %cst_14 {dimension_numbers = #tpu.dot_dimension_numbers<[1], [0], [0], [1], [0, 0, 1, 1], [], []>} : vector<128x128xbf16>, vector<128x128xbf16>, vector<128x128xf32> -> vector<128x128xf32>
    %30 = vector.broadcast %15 : vector<1x128xf32> to vector<128x128xf32>
    %31 = arith.addf %29, %30 : vector<128x128xf32>
    %cst_15 = arith.constant 0.000000e+00 : f32
    %32 = vector.broadcast %cst_15 : f32 to vector<128x128xf32>
    %33 = arith.maximumf %31, %32 : vector<128x128xf32>
    %34 = arith.truncf %33 : vector<128x128xf32> to vector<128x128xbf16>
    %cst_16 = arith.constant dense<0.000000e+00> : vector<128x128xf32>
    %35 = tpu.matmul %34, %10, %cst_16 {dimension_numbers = #tpu.dot_dimension_numbers<[1], [0], [0], [1], [0, 0, 1, 1], [], []>} : vector<128x128xbf16>, vector<128x128xbf16>, vector<128x128xf32> -> vector<128x128xf32>
    %cst_17 = arith.constant dense<0.000000e+00> : vector<128x128xf32>
    %36 = tpu.matmul %2, %12, %cst_17 {dimension_numbers = #tpu.dot_dimension_numbers<[1], [0], [0], [1], [0, 0, 1, 1], [], []>} : vector<128x128xbf16>, vector<128x128xbf16>, vector<128x128xf32> -> vector<128x128xf32>
    %37 = arith.addf %35, %36 : vector<128x128xf32>
    %38 = arith.truncf %37 : vector<128x128xf32> to vector<128x128xbf16>
    %cst_18 = arith.constant dense<0.000000e+00> : vector<128x128xf32>
    %39 = tpu.matmul %0, %38, %cst_18 {dimension_numbers = #tpu.dot_dimension_numbers<[1], [0], [0], [1], [0, 0, 1, 1], [], []>} : vector<128x128xbf16>, vector<128x128xbf16>, vector<128x128xf32> -> vector<128x128xf32>
    %40 = vector.broadcast %16 : vector<1x128xf32> to vector<128x128xf32>
    %41 = arith.addf %39, %40 : vector<128x128xf32>
    %c0_19 = arith.constant 0 : index
    %c0_20 = arith.constant 0 : index
    %42 = vector.load %arg3[%c0_19, %c0_20] : memref<128x128xf32, #tpu.memory_space<vmem>>, vector<128x128xf32>
    tpu.vector_store %arg3[%c0_19, %c0_20], %41 {strides = array<i32>} : memref<128x128xf32, #tpu.memory_space<vmem>>, vector<128x128xf32>,
    return
  }
}

</mosaic_0001>

<bundles_post_ra>
// kernel: tpu_custom_call.1
= control target key start
LH: loop header
LB: loop body
LE: loop exit
PB: predicated region body
PF: predicated region fallthrough
CT: control target
= control target key end

     0   :  { %8 = vsyncpa [#allocation3], 0  ;;  %s1094_s0 = inlined_call_operand.hbm [shape: bf16[128,128], index: 0, kind: input, shape index: {}]   ;;  %s1095_s1 = inlined_call_operand.hbm [shape: f32[128,128], index: 1, kind: input, shape index: {}]   ;;  %s1096_s2 = inlined_call_operand.hbm [shape: f32[648,128], index: 2, kind: input, shape index: {}]   ;;  %s1097_s3 = inlined_call_operand.hbm [shape: f32[128,128], index: 3, kind: output, shape index: {}]  }
   0x1   :  { %9 = vsyncpa [#allocation6], 0  ;;  %s28_s14 = sshll.u32 %s1095_s1, 4  ;;  %s29_s14 = int_to_ptr.hbm [resolvable:$true] %s28_s14 }
   0x2   :  { %10 = vsyncpa [#allocation4], 0  ;;  %s924_s15 = smov [#allocation5]   ;;  %s15_s19 = sshll.u32 %s1094_s0, 4  ;;  %s16_s19 = int_to_ptr.hbm [resolvable:$true] %s15_s19 }
   0x3   :  { %s30_s16 = sshll.u32 %s924_s15, 4  ;;  %s925_s20 = smov 128   ;;  %s31_s16 = int_to_ptr.vmem [resolvable:$true] %s30_s16 }
   0x4   :  { %s926_s21 = smov 8   ;;  %s927_s22 = smov [#allocation2]  }
   0x5   :  { %36 = dma.hbm_to_vmem [thread:$0]  %s29_s14, 2048, %s31_s16, [#allocation6], %s925_s20, %s925_s20, %s926_s21  }
   0x6   :  { %s17_s23 = sshll.u32 %s927_s22, 4  ;;  %s928_s1 = smov 64   ;;  %s18_s23 = int_to_ptr.vmem [resolvable:$true] %s17_s23 }
   0x7   :  { %s929_s24 = smov 4   ;;  %s41_s27 = sshll.u32 %s1096_s2, 4  ;;  %s42_s27 = int_to_ptr.hbm [resolvable:$true] %s41_s27 }
   0x8   :  { %23 = dma.hbm_to_vmem [thread:$0]  %s16_s19, 1024, %s18_s23, [#allocation3], %s928_s1, %s928_s1, %s929_s24  }
   0x9   :  { %s930_s28 = smov [#allocation7]  }
   0xa   :  { %s43_s0 = sshll.u32 %s930_s28, 4  ;;  %s44_s0 = int_to_ptr.vmem [resolvable:$true] %s43_s0 }
   0xb   :  { %49 = dma.hbm_to_vmem [thread:$0]  %s42_s27, 10368, %s44_s0, [#allocation6], %s925_s20, %s925_s20, %s926_s21  }
   0xc   :  { %918 = dma.done.wait [#allocation3], 1024  }
   0xd   :  { %919 = vsyncadd [#allocation3], 4294966272 }
   0xe   :  { %920 = dma.done.wait [#allocation6], 12416  }
   0xf   :  { %921 = vsyncadd [#allocation6], 4294954880  ;;  %v116_v0 = vld [vmem:[#allocation7 + $0x70] sm:$0xff]  ;;  %v117_v1 = vld [vmem:[#allocation7 + $0x78] sm:$0xff]  ;;  %s931_s2 = smov [#allocation8]   ;;  %s760_s5 = sshll.u32 %s1097_s3, 4  ;;  %s761_s5 = int_to_ptr.hbm [resolvable:$true] %s760_s5 }
  0x10   :  { %v114_v2 = vld [vmem:[#allocation7 + $0x60] sm:$0xff]  ;;  %v125_v3 = vpack.c.bf16 %v117_v1, %v116_v0  ;;  %v115_v4 = vld [vmem:[#allocation7 + $0x68] sm:$0xff]  ;;  %v112_v6 = vld [vmem:[#allocation7 + $0x50] sm:$0xff]  ;;  %s758_s29 = sshll.u32 %s931_s2, 4  ;;  %s759_s29 = int_to_ptr.vmem [resolvable:$true] %s758_s29 }
  0x11   :  { %v124_v5 = vpack.c.bf16 %v115_v4, %v114_v2  ;;  %v113_v7 = vld [vmem:[#allocation7 + $0x58] sm:$0xff]  ;;  %v110_v9 = vld [vmem:[#allocation7 + $0x40] sm:$0xff]  ;;  %v111_v10 = vld [vmem:[#allocation7 + $0x48] sm:$0xff] }
  0x12   :  { %223 = vmatpush.bf16.msra.mxu0 %v125_v3  ;;  %v123_v8 = vpack.c.bf16 %v113_v7, %v112_v6  ;;  %v122_v11 = vpack.c.bf16 %v111_v10, %v110_v9  ;;  %v108_v12 = vld [vmem:[#allocation7 + $0x30] sm:$0xff]  ;;  %v109_v13 = vld [vmem:[#allocation7 + $0x38] sm:$0xff]  ;;  %v106_v15 = vld [vmem:[#allocation7 + $0x20] sm:$0xff] }
  0x13   :  { %v121_v14 = vpack.c.bf16 %v109_v13, %v108_v12  ;;  %v107_v16 = vld [vmem:[#allocation7 + $0x28] sm:$0xff]  ;;  %v104_v18 = vld [vmem:[#allocation7 + $0x10] sm:$0xff]  ;;  %v105_v19 = vld [vmem:[#allocation7 + $0x18] sm:$0xff] }
  0x14   :  { %v120_v17 = vpack.c.bf16 %v107_v16, %v106_v15  ;;  %v119_v20 = vpack.c.bf16 %v105_v19, %v104_v18  ;;  %v102_v21 = vld [vmem:[#allocation7] sm:$0xff]  ;;  %v103_v22 = vld [vmem:[#allocation7 + $0x8] sm:$0xff]  ;;  %v80_v27 = vld [vmem:[#allocation5 + $0x10] sm:$0xff] }
  0x15   :  { %v118_v23 = vpack.c.bf16 %v103_v22, %v102_v21  ;;  %v78_v24 = vld [vmem:[#allocation5] sm:$0xff]  ;;  %v79_v25 = vld [vmem:[#allocation5 + $0x8] sm:$0xff]  ;;  %v81_v28 = vld [vmem:[#allocation5 + $0x18] sm:$0xff] }
  0x16   :  { %224 = vmatpush.bf16.msra.mxu0 %v124_v5  ;;  %v967_v26 = vpack.c.bf16 %v79_v25, %v78_v24  ;;  %v970_v29 = vpack.c.bf16 %v81_v28, %v80_v27  ;;  %v82_v30 = vld [vmem:[#allocation5 + $0x20] sm:$0xff]  ;;  %v83_v31 = vld [vmem:[#allocation5 + $0x28] sm:$0xff]  ;;  %v84_v33 = vld [vmem:[#allocation5 + $0x30] sm:$0xff] }
  0x17   :  { %v973_v32 = vpack.c.bf16 %v83_v31, %v82_v30  ;;  %v85_v34 = vld [vmem:[#allocation5 + $0x38] sm:$0xff]  ;;  %v86_v36 = vld [vmem:[#allocation5 + $0x40] sm:$0xff]  ;;  %v87_v37 = vld [vmem:[#allocation5 + $0x48] sm:$0xff] }
  0x18   :  { %v976_v35 = vpack.c.bf16 %v85_v34, %v84_v33  ;;  %v979_v38 = vpack.c.bf16 %v87_v37, %v86_v36  ;;  %v88_v39 = vld [vmem:[#allocation5 + $0x50] sm:$0xff]  ;;  %v89_v40 = vld [vmem:[#allocation5 + $0x58] sm:$0xff]  ;;  %v90_v42 = vld [vmem:[#allocation5 + $0x60] sm:$0xff] }
  0x19   :  { %v982_v41 = vpack.c.bf16 %v89_v40, %v88_v39  ;;  %v91_v43 = vld [vmem:[#allocation5 + $0x68] sm:$0xff]  ;;  %v92_v45 = vld [vmem:[#allocation5 + $0x70] sm:$0xff]  ;;  %v93_v46 = vld [vmem:[#allocation5 + $0x78] sm:$0xff] }
  0x1a   :  { %225 = vmatpush.bf16.msra.mxu0 %v123_v8  ;;  %v985_v44 = vpack.c.bf16 %v91_v43, %v90_v42  ;;  %v988_v47 = vpack.c.bf16 %v93_v46, %v92_v45  ;;  %v991_v8 = vld [vmem:[#allocation2] sm:$0xff]  ;;  %v994_v9 = vld [vmem:[#allocation2 + $0x8] sm:$0xff]  ;;  %v997_v10 = vld [vmem:[#allocation2 + $0x10] sm:$0xff] }
  0x1b   :  { %v1003_v12 = vld [vmem:[#allocation2 + $0x20] sm:$0xff]  ;;  %v164_v13 = vld [vmem:[#allocation7 + $0x170] sm:$0xff]  ;;  %v141_v19 = vld [vmem:[#allocation7 + $0xf8] sm:$0xff] }
  0x1c   :  { %v162_v15 = vld [vmem:[#allocation7 + $0x160] sm:$0xff]  ;;  %v140_v18 = vld [vmem:[#allocation7 + $0xf0] sm:$0xff]  ;;  %v1006_v25 = vld [vmem:[#allocation2 + $0x28] sm:$0xff] }
  0x1d   :  { %v149_v21 = vpack.c.bf16 %v141_v19, %v140_v18  ;;  %v160_v22 = vld [vmem:[#allocation7 + $0x150] sm:$0xff]  ;;  %v158_v27 = vld [vmem:[#allocation7 + $0x140] sm:$0xff]  ;;  %v159_v28 = vld [vmem:[#allocation7 + $0x148] sm:$0xff] }
  0x1e   :  { %226 = vmatpush.bf16.msra.mxu0 %v122_v11  ;;  %v1000_v11 = vld [vmem:[#allocation2 + $0x18] sm:$0xff]  ;;  %v138_v30 = vld [vmem:[#allocation7 + $0xe0] sm:$0xff]  ;;  %v170_v31 = vpack.c.bf16 %v159_v28, %v158_v27  ;;  %v139_v33 = vld [vmem:[#allocation7 + $0xe8] sm:$0xff] }
  0x1f   :  { %451 = vmatpush.bf16.msra.mxu3 %v149_v21  ;;  %v148_v34 = vpack.c.bf16 %v139_v33, %v138_v30  ;;  %v156_v36 = vld [vmem:[#allocation7 + $0x130] sm:$0xff]  ;;  %v157_v37 = vld [vmem:[#allocation7 + $0x138] sm:$0xff]  ;;  %v154_v45 = vld [vmem:[#allocation7 + $0x120] sm:$0xff] }
  0x20   :  { %v136_v39 = vld [vmem:[#allocation7 + $0xd0] sm:$0xff]  ;;  %v169_v40 = vpack.c.bf16 %v157_v37, %v156_v36  ;;  %v137_v42 = vld [vmem:[#allocation7 + $0xd8] sm:$0xff]  ;;  %v155_v46 = vld [vmem:[#allocation7 + $0x128] sm:$0xff] }
  0x21   :  { %v147_v43 = vpack.c.bf16 %v137_v42, %v136_v39 }
  0x22   :  { %227 = vmatpush.bf16.msra.mxu0 %v121_v14  ;;  %v165_v14 = vld [vmem:[#allocation7 + $0x178] sm:$0xff] }
  0x23   :  { %v173_v16 = vpack.c.bf16 %v165_v14, %v164_v13  ;;  %452 = vmatpush.bf16.msra.mxu3 %v148_v34  ;;  %v1017_v13 = vld [vmem:[#allocation7 + $0x280] sm:$0xff] }
  0x25   :  { %402 = vmatpush.bf16.msra.mxu2 %v173_v16 }
  0x26   :  { %228 = vmatpush.bf16.msra.mxu0 %v120_v17  ;;  %v163_v17 = vld [vmem:[#allocation7 + $0x168] sm:$0xff] }
  0x27   :  { %453 = vmatpush.bf16.msra.mxu3 %v147_v43 }
  0x2a   :  { %229 = vmatpush.bf16.msra.mxu0 %v119_v20  ;;  %v172_v20 = vpack.c.bf16 %v163_v17, %v162_v15  ;;  %v1020_v15 = vperm.slane %v1017_v13, 0 }
  0x2c   :  { %403 = vmatpush.bf16.msra.mxu2 %v172_v20 }
  0x2e   :  { %230 = vmatpush.bf16.msra.mxu0 %v118_v23  ;;  %v161_v23 = vld [vmem:[#allocation7 + $0x158] sm:$0xff] }
  0x2f   :  { %v171_v24 = vpack.c.bf16 %v161_v23, %v160_v22 }
  0x31   :  { %231 = vmatmul.bf16.vlgmr.msra.gmra.mxu0 %v967_v26  ;;  %404 = vmatpush.bf16.msra.mxu2 %v171_v24 }
  0x35   :  { %405 = vmatpush.bf16.msra.mxu2 %v170_v31 }
  0x39   :  { %406 = vmatpush.bf16.msra.mxu2 %v169_v40 }
  0x41   :  { %236 = vmatmul.bf16.gmra.mxu0 %v970_v29 }
  0x51   :  { %241 = vmatmul.bf16.gmra.mxu0 %v973_v32 }
  0x61   :  { %246 = vmatmul.bf16.gmra.mxu0 %v976_v35 }
  0x71   :  { %251 = vmatmul.bf16.gmra.mxu0 %v979_v38 }
  0x81   :  { %256 = vmatmul.bf16.gmra.mxu0 %v982_v41 }
  0x91   :  { %261 = vmatmul.bf16.gmra.mxu0 %v985_v44 }
  0xa1   :  { %266 = vmatmul.bf16.gmra.mxu0 %v988_v47 }
  0xae   :  { %v232_v48 = vpop.f32.mrf.mxu0 }
  0xb6   :  { %v234_v49 = vpop.f32.mrf.mxu0 }
  0xb7   :  { %v272_v7 = vpack.c.bf16 %v234_v49, %v232_v48  ;;  %v134_v48 = vld [vmem:[#allocation7 + $0xc0] sm:$0xff]  ;;  %v135_v49 = vld [vmem:[#allocation7 + $0xc8] sm:$0xff] }
  0xbe   :  { %v237_v50 = vpop.f32.mrf.mxu0 }
  0xc6   :  { %v239_v51 = vpop.f32.mrf.mxu0 }
  0xc7   :  { %v273_v6 = vpack.c.bf16 %v239_v51, %v237_v50  ;;  %v168_v50 = vpack.c.bf16 %v155_v46, %v154_v45  ;;  %v146_v51 = vpack.c.bf16 %v135_v49, %v134_v48 }
  0xc9   :  { %407 = vmatpush.bf16.msra.mxu2 %v168_v50  ;;  %454 = vmatpush.bf16.msra.mxu3 %v146_v51 }
  0xce   :  { %v242_v52 = vpop.f32.mrf.mxu0 }
  0xd6   :  { %v244_v53 = vpop.f32.mrf.mxu0 }
  0xd7   :  { %v274_v5 = vpack.c.bf16 %v244_v53, %v242_v52  ;;  %v152_v52 = vld [vmem:[#allocation7 + $0x110] sm:$0xff]  ;;  %v153_v53 = vld [vmem:[#allocation7 + $0x118] sm:$0xff] }
  0xde   :  { %v247_v54 = vpop.f32.mrf.mxu0 }
  0xe6   :  { %v249_v55 = vpop.f32.mrf.mxu0 }
  0xe7   :  { %v275_v4 = vpack.c.bf16 %v249_v55, %v247_v54  ;;  %v132_v54 = vld [vmem:[#allocation7 + $0xb0] sm:$0xff]  ;;  %v167_v55 = vpack.c.bf16 %v153_v53, %v152_v52 }
  0xe9   :  { %408 = vmatpush.bf16.msra.mxu2 %v167_v55 }
  0xee   :  { %v252_v56 = vpop.f32.mrf.mxu0 }
  0xf6   :  { %v254_v57 = vpop.f32.mrf.mxu0 }
  0xf7   :  { %v276_v3 = vpack.c.bf16 %v254_v57, %v252_v56  ;;  %v133_v56 = vld [vmem:[#allocation7 + $0xb8] sm:$0xff]  ;;  %v1009_v57 = vld [vmem:[#allocation2 + $0x30] sm:$0xff] }
  0xfe   :  { %v257_v58 = vpop.f32.mrf.mxu0 }
 0x106   :  { %v259_v59 = vpop.f32.mrf.mxu0 }
 0x107   :  { %v277_v2 = vpack.c.bf16 %v259_v59, %v257_v58  ;;  %v145_v58 = vpack.c.bf16 %v133_v56, %v132_v54  ;;  %v150_v59 = vld [vmem:[#allocation7 + $0x100] sm:$0xff] }
 0x109   :  { %455 = vmatpush.bf16.msra.mxu3 %v145_v58 }
 0x10e   :  { %v262_v60 = vpop.f32.mrf.mxu0 }
 0x116   :  { %v264_v61 = vpop.f32.mrf.mxu0 }
 0x117   :  { %v278_v1 = vpack.c.bf16 %v264_v61, %v262_v60  ;;  %v151_v60 = vld [vmem:[#allocation7 + $0x108] sm:$0xff]  ;;  %v130_v61 = vld [vmem:[#allocation7 + $0xa0] sm:$0xff] }
 0x11e   :  { %v267_v62 = vpop.f32.mrf.mxu0 }
 0x126   :  { %v269_v63 = vpop.f32.mrf.mxu0 }
 0x127   :  { %v279_v0 = vpack.c.bf16 %v269_v63, %v267_v62  ;;  %v166_v62 = vpack.c.bf16 %v151_v60, %v150_v59  ;;  %v131_v63 = vld [vmem:[#allocation7 + $0xa8] sm:$0xff] }
 0x129   :  { %329 = vmatpush.bf16.msra.mxu1 %v279_v0  ;;  %v144_v0 = vpack.c.bf16 %v131_v63, %v130_v61  ;;  %409 = vmatpush.bf16.msra.mxu2 %v166_v62 }
 0x12b   :  { %456 = vmatpush.bf16.msra.mxu3 %v144_v0 }
 0x12c   :  { %410 = vmatmul.bf16.vlgmr.msra.gmra.mxu2 %v967_v26 }
 0x12d   :  { %330 = vmatpush.bf16.msra.mxu1 %v278_v1  ;;  %v128_v1 = vld [vmem:[#allocation7 + $0x90] sm:$0xff] }
 0x131   :  { %331 = vmatpush.bf16.msra.mxu1 %v277_v2  ;;  %v129_v2 = vld [vmem:[#allocation7 + $0x98] sm:$0xff] }
 0x135   :  { %332 = vmatpush.bf16.msra.mxu1 %v276_v3  ;;  %v143_v3 = vpack.c.bf16 %v129_v2, %v128_v1 }
 0x137   :  { %457 = vmatpush.bf16.msra.mxu3 %v143_v3 }
 0x139   :  { %333 = vmatpush.bf16.msra.mxu1 %v275_v4  ;;  %v126_v4 = vld [vmem:[#allocation7 + $0x80] sm:$0xff] }
 0x13c   :  { %415 = vmatmul.bf16.gmra.mxu2 %v970_v29 }
 0x13d   :  { %334 = vmatpush.bf16.msra.mxu1 %v274_v5  ;;  %v127_v5 = vld [vmem:[#allocation7 + $0x88] sm:$0xff] }
 0x141   :  { %335 = vmatpush.bf16.msra.mxu1 %v273_v6  ;;  %v142_v6 = vpack.c.bf16 %v127_v5, %v126_v4 }
 0x143   :  { %458 = vmatpush.bf16.msra.mxu3 %v142_v6 }
 0x145   :  { %336 = vmatpush.bf16.msra.mxu1 %v272_v7  ;;  %v1013_v7 = vld [vmem:[#allocation2 + $0x38] sm:$0xff] }
 0x148   :  { %337 = vmatmul.bf16.vlgmr.msra.gmra.mxu1 %v991_v8 }
 0x14c   :  { %420 = vmatmul.bf16.gmra.mxu2 %v973_v32 }
 0x158   :  { %342 = vmatmul.bf16.gmra.mxu1 %v994_v9 }
 0x15c   :  { %425 = vmatmul.bf16.gmra.mxu2 %v976_v35 }
 0x168   :  { %347 = vmatmul.bf16.gmra.mxu1 %v997_v10 }
 0x16c   :  { %430 = vmatmul.bf16.gmra.mxu2 %v979_v38 }
 0x178   :  { %352 = vmatmul.bf16.gmra.mxu1 %v1000_v11 }
 0x17c   :  { %435 = vmatmul.bf16.gmra.mxu2 %v982_v41 }
 0x188   :  { %357 = vmatmul.bf16.gmra.mxu1 %v1003_v12 }
 0x18c   :  { %440 = vmatmul.bf16.gmra.mxu2 %v985_v44 }
 0x198   :  { %362 = vmatmul.bf16.gmra.mxu1 %v1006_v25 }
 0x19c   :  { %445 = vmatmul.bf16.gmra.mxu2 %v988_v47 }
 0x1a8   :  { %367 = vmatmul.bf16.gmra.mxu1 %v1009_v57 }
 0x1b8   :  { %372 = vmatmul.bf16.gmra.mxu1 %v1013_v7 }
 0x1c5   :  { %v338_v14 = vpop.f32.mrf.mxu1 }
 0x1c6   :  { %v339_v16 = vadd.f32 %v338_v14, %v1020_v15 }
 0x1c8   :  { %v378_v19 = vmax.f32 %v339_v16, 0.0 }
 0x1cd   :  { %v340_v17 = vpop.f32.mrf.mxu1 }
 0x1ce   :  { %v341_v18 = vadd.f32 %v340_v17, %v1020_v15 }
 0x1d0   :  { %v379_v20 = vmax.f32 %v341_v18, 0.0 }
 0x1d2   :  { %v394_v21 = vpack.c.bf16 %v379_v20, %v378_v19  ;;  %v411_v19 = vpop.f32.mrf.mxu2 }
 0x1d4   :  { %459 = vmatmul.bf16.vlgmr.msra.gmra.mxu3 %v394_v21 }
 0x1d5   :  { %v343_v22 = vpop.f32.mrf.mxu1 }
 0x1d6   :  { %v344_v23 = vadd.f32 %v343_v22, %v1020_v15 }
 0x1d8   :  { %v380_v28 = vmax.f32 %v344_v23, 0.0 }
 0x1dd   :  { %v345_v24 = vpop.f32.mrf.mxu1 }
 0x1de   :  { %v346_v27 = vadd.f32 %v345_v24, %v1020_v15 }
 0x1e0   :  { %v381_v30 = vmax.f32 %v346_v27, 0.0 }
 0x1e2   :  { %v395_v31 = vpack.c.bf16 %v381_v30, %v380_v28  ;;  %v413_v28 = vpop.f32.mrf.mxu2 }
 0x1e4   :  { %464 = vmatmul.bf16.gmra.mxu3 %v395_v31 }
 0x1e5   :  { %v348_v33 = vpop.f32.mrf.mxu1 }
 0x1e6   :  { %v349_v34 = vadd.f32 %v348_v33, %v1020_v15 }
 0x1e8   :  { %v382_v39 = vmax.f32 %v349_v34, 0.0 }
 0x1ea   :  { %v416_v30 = vpop.f32.mrf.mxu2 }
 0x1ed   :  { %v350_v36 = vpop.f32.mrf.mxu1 }
 0x1ee   :  { %v351_v37 = vadd.f32 %v350_v36, %v1020_v15 }
 0x1f0   :  { %v383_v40 = vmax.f32 %v351_v37, 0.0 }
 0x1f2   :  { %v396_v42 = vpack.c.bf16 %v383_v40, %v382_v39  ;;  %v418_v33 = vpop.f32.mrf.mxu2 }
 0x1f4   :  { %469 = vmatmul.bf16.gmra.mxu3 %v396_v42 }
 0x1f5   :  { %v353_v43 = vpop.f32.mrf.mxu1 }
 0x1f6   :  { %v354_v45 = vadd.f32 %v353_v43, %v1020_v15 }
 0x1f8   :  { %v384_v49 = vmax.f32 %v354_v45, 0.0 }
 0x1fa   :  { %v421_v37 = vpop.f32.mrf.mxu2 }
 0x1fd   :  { %v355_v46 = vpop.f32.mrf.mxu1 }
 0x1fe   :  { %v356_v48 = vadd.f32 %v355_v46, %v1020_v15 }
 0x200   :  { %v385_v50 = vmax.f32 %v356_v48, 0.0 }
 0x202   :  { %v397_v51 = vpack.c.bf16 %v385_v50, %v384_v49  ;;  %v423_v42 = vpop.f32.mrf.mxu2 }
 0x204   :  { %474 = vmatmul.bf16.gmra.mxu3 %v397_v51 }
 0x205   :  { %v358_v52 = vpop.f32.mrf.mxu1 }
 0x206   :  { %v359_v53 = vadd.f32 %v358_v52, %v1020_v15 }
 0x208   :  { %v386_v56 = vmax.f32 %v359_v53, 0.0 }
 0x20a   :  { %v426_v45 = vpop.f32.mrf.mxu2 }
 0x20d   :  { %v360_v54 = vpop.f32.mrf.mxu1 }
 0x20e   :  { %v361_v55 = vadd.f32 %v360_v54, %v1020_v15 }
 0x210   :  { %v387_v58 = vmax.f32 %v361_v55, 0.0 }
 0x212   :  { %v398_v59 = vpack.c.bf16 %v387_v58, %v386_v56 }
 0x214   :  { %479 = vmatmul.bf16.gmra.mxu3 %v398_v59 }
 0x215   :  { %v363_v60 = vpop.f32.mrf.mxu1 }
 0x216   :  { %v364_v61 = vadd.f32 %v363_v60, %v1020_v15 }
 0x218   :  { %v388_v0 = vmax.f32 %v364_v61, 0.0 }
 0x21d   :  { %v365_v62 = vpop.f32.mrf.mxu1 }
 0x21e   :  { %v366_v63 = vadd.f32 %v365_v62, %v1020_v15 }
 0x220   :  { %v389_v1 = vmax.f32 %v366_v63, 0.0 }
 0x222   :  { %v399_v2 = vpack.c.bf16 %v389_v1, %v388_v0 }
 0x224   :  { %484 = vmatmul.bf16.gmra.mxu3 %v399_v2 }
 0x225   :  { %v368_v3 = vpop.f32.mrf.mxu1 }
 0x226   :  { %v369_v4 = vadd.f32 %v368_v3, %v1020_v15 }
 0x228   :  { %v390_v14 = vmax.f32 %v369_v4, 0.0 }
 0x22d   :  { %v370_v5 = vpop.f32.mrf.mxu1 }
 0x22e   :  { %v371_v6 = vadd.f32 %v370_v5, %v1020_v15 }
 0x230   :  { %v391_v16 = vmax.f32 %v371_v6, 0.0 }
 0x232   :  { %v400_v17 = vpack.c.bf16 %v391_v16, %v390_v14 }
 0x234   :  { %489 = vmatmul.bf16.gmra.mxu3 %v400_v17 }
 0x235   :  { %v373_v18 = vpop.f32.mrf.mxu1 }
 0x236   :  { %v374_v20 = vadd.f32 %v373_v18, %v1020_v15 }
 0x238   :  { %v392_v23 = vmax.f32 %v374_v20, 0.0 }
 0x23d   :  { %v375_v21 = vpop.f32.mrf.mxu1 }
 0x23e   :  { %v376_v22 = vadd.f32 %v375_v21, %v1020_v15  ;;  %v428_v15 = vpop.f32.mrf.mxu2 }
 0x240   :  { %v393_v24 = vmax.f32 %v376_v22, 0.0 }
 0x242   :  { %v401_v27 = vpack.c.bf16 %v393_v24, %v392_v23 }
 0x244   :  { %494 = vmatmul.bf16.gmra.mxu3 %v401_v27 }
 0x246   :  { %v431_v52 = vpop.f32.mrf.mxu2 }
 0x24e   :  { %v433_v54 = vpop.f32.mrf.mxu2 }
 0x256   :  { %v436_v58 = vpop.f32.mrf.mxu2 }
 0x257   :  { %v460_v31 = vpop.f32.mrf.mxu3 }
 0x258   :  { %v461_v34 = vadd.f32 %v460_v31, %v411_v19 }
 0x25e   :  { %v438_v60 = vpop.f32.mrf.mxu2 }
 0x25f   :  { %v462_v36 = vpop.f32.mrf.mxu3 }
 0x266   :  { %v441_v63 = vpop.f32.mrf.mxu2 }
 0x267   :  { %v465_v39 = vpop.f32.mrf.mxu3 }
 0x268   :  { %v466_v40 = vadd.f32 %v465_v39, %v416_v30 }
 0x26e   :  { %v443_v1 = vpop.f32.mrf.mxu2 }
 0x26f   :  { %v467_v43 = vpop.f32.mrf.mxu3 }
 0x270   :  { %v468_v39 = vadd.f32 %v467_v43, %v418_v33  ;;  %v188_v33 = vld [vmem:[#allocation7 + $0x1f0] sm:$0xff] }
 0x276   :  { %v446_v3 = vpop.f32.mrf.mxu2 }
 0x277   :  { %v470_v46 = vpop.f32.mrf.mxu3 }
 0x278   :  { %v471_v48 = vadd.f32 %v470_v46, %v421_v37  ;;  %v463_v46 = vadd.f32 %v462_v36, %v413_v28  ;;  %v210_v28 = vld [vmem:[#allocation7 + $0x260] sm:$0xff]  ;;  %v211_v36 = vld [vmem:[#allocation7 + $0x268] sm:$0xff] }
 0x27e   :  { %v448_v5 = vpop.f32.mrf.mxu2 }
 0x27f   :  { %v472_v49 = vpop.f32.mrf.mxu3 }
 0x280   :  { %v473_v31 = vadd.f32 %v472_v49, %v423_v42  ;;  %v212_v42 = vld [vmem:[#allocation7 + $0x270] sm:$0xff]  ;;  %v213_v49 = vld [vmem:[#allocation7 + $0x278] sm:$0xff] }
 0x281   :  { %v221_v43 = vpack.c.bf16 %v213_v49, %v212_v42 }
 0x283   :  { %582 = vmatpush.bf16.msrb.mxu1 %v221_v43 }
 0x287   :  { %v475_v50 = vpop.f32.mrf.mxu3 }
 0x288   :  { %v476_v51 = vadd.f32 %v475_v50, %v426_v45  ;;  %v502_v45 = vpack.c.bf16 %v473_v31, %v471_v48  ;;  %v501_v50 = vpack.c.bf16 %v468_v39, %v466_v40  ;;  %v189_v48 = vld [vmem:[#allocation7 + $0x1f8] sm:$0xff]  ;;  %v198_v39 = vld [vmem:[#allocation7 + $0x200] sm:$0xff] }
 0x289   :  { %v197_v40 = vpack.c.bf16 %v189_v48, %v188_v33  ;;  %v177_v31 = vld [vmem:[#allocation7 + $0x198] sm:$0xff]  ;;  %v1055_v33 = vperm.slane %v1017_v13, 1 }
 0x28b   :  { %631 = vmatpush.bf16.msrb.mxu2 %v197_v40 }
 0x28f   :  { %v477_v53 = vpop.f32.mrf.mxu3 }
 0x290   :  { %v478_v27 = vadd.f32 %v477_v53, %v428_v15  ;;  %v186_v15 = vld [vmem:[#allocation7 + $0x1e0] sm:$0xff] }
 0x292   :  { %v503_v37 = vpack.c.bf16 %v478_v27, %v476_v51  ;;  %v187_v51 = vld [vmem:[#allocation7 + $0x1e8] sm:$0xff] }
 0x293   :  { %v196_v53 = vpack.c.bf16 %v187_v51, %v186_v15 }
 0x295   :  { %632 = vmatpush.bf16.msrb.mxu2 %v196_v53 }
 0x297   :  { %v480_v55 = vpop.f32.mrf.mxu3 }
 0x298   :  { %v481_v56 = vadd.f32 %v480_v55, %v431_v52  ;;  %v500_v52 = vpack.c.bf16 %v463_v46, %v461_v34  ;;  %v220_v34 = vpack.c.bf16 %v211_v36, %v210_v28  ;;  %v209_v55 = vld [vmem:[#allocation7 + $0x258] sm:$0xff] }
 0x29a   :  { %583 = vmatpush.bf16.msrb.mxu1 %v220_v34 }
 0x29f   :  { %v482_v59 = vpop.f32.mrf.mxu3 }
 0x2a0   :  { %v483_v23 = vadd.f32 %v482_v59, %v433_v54  ;;  %v208_v54 = vld [vmem:[#allocation7 + $0x250] sm:$0xff]  ;;  %v185_v59 = vld [vmem:[#allocation7 + $0x1d8] sm:$0xff] }
 0x2a2   :  { %v504_v30 = vpack.c.bf16 %v483_v23, %v481_v56  ;;  %v184_v56 = vld [vmem:[#allocation7 + $0x1d0] sm:$0xff] }
 0x2a3   :  { %v200_v23 = vld [vmem:[#allocation7 + $0x210] sm:$0xff] }
 0x2a7   :  { %v485_v61 = vpop.f32.mrf.mxu3 }
 0x2a8   :  { %v486_v22 = vadd.f32 %v485_v61, %v436_v58  ;;  %v219_v58 = vpack.c.bf16 %v209_v55, %v208_v54  ;;  %v207_v61 = vld [vmem:[#allocation7 + $0x248] sm:$0xff] }
 0x2aa   :  { %584 = vmatpush.bf16.msrb.mxu1 %v219_v58 }
 0x2af   :  { %v487_v62 = vpop.f32.mrf.mxu3 }
 0x2b0   :  { %v488_v20 = vadd.f32 %v487_v62, %v438_v60  ;;  %v206_v60 = vld [vmem:[#allocation7 + $0x240] sm:$0xff]  ;;  %v195_v62 = vpack.c.bf16 %v185_v59, %v184_v56 }
 0x2b2   :  { %v505_v24 = vpack.c.bf16 %v488_v20, %v486_v22  ;;  %633 = vmatpush.bf16.msrb.mxu2 %v195_v62  ;;  %v178_v20 = vld [vmem:[#allocation7 + $0x1a0] sm:$0xff] }
 0x2b7   :  { %v490_v0 = vpop.f32.mrf.mxu3 }
 0x2b8   :  { %v491_v19 = vadd.f32 %v490_v0, %v441_v63  ;;  %v182_v63 = vld [vmem:[#allocation7 + $0x1c0] sm:$0xff]  ;;  %v183_v0 = vld [vmem:[#allocation7 + $0x1c8] sm:$0xff] }
 0x2bf   :  { %v492_v2 = vpop.f32.mrf.mxu3 }
 0x2c0   :  { %v493_v17 = vadd.f32 %v492_v2, %v443_v1  ;;  %v218_v1 = vpack.c.bf16 %v207_v61, %v206_v60  ;;  %v204_v2 = vld [vmem:[#allocation7 + $0x230] sm:$0xff] }
 0x2c2   :  { %v506_v21 = vpack.c.bf16 %v493_v17, %v491_v19  ;;  %585 = vmatpush.bf16.msrb.mxu1 %v218_v1  ;;  %v202_v17 = vld [vmem:[#allocation7 + $0x220] sm:$0xff] }
 0x2c7   :  { %v495_v4 = vpop.f32.mrf.mxu3 }
 0x2c8   :  { %v496_v14 = vadd.f32 %v495_v4, %v446_v3  ;;  %v205_v3 = vld [vmem:[#allocation7 + $0x238] sm:$0xff]  ;;  %v194_v4 = vpack.c.bf16 %v183_v0, %v182_v63 }
 0x2ca   :  { %634 = vmatpush.bf16.msrb.mxu2 %v194_v4 }
 0x2cf   :  { %v497_v6 = vpop.f32.mrf.mxu3 }
 0x2d0   :  { %v498_v16 = vadd.f32 %v497_v6, %v448_v5  ;;  %v217_v5 = vpack.c.bf16 %v205_v3, %v204_v2  ;;  %v180_v6 = vld [vmem:[#allocation7 + $0x1b0] sm:$0xff] }
 0x2d2   :  { %v507_v18 = vpack.c.bf16 %v498_v16, %v496_v14  ;;  %v181_v14 = vld [vmem:[#allocation7 + $0x1b8] sm:$0xff]  ;;  %586 = vmatpush.bf16.msrb.mxu1 %v217_v5 }
 0x2d3   :  { %v193_v16 = vpack.c.bf16 %v181_v14, %v180_v6 }
 0x2d4   :  { %509 = vmatpush.bf16.msrb.mxu0 %v507_v18  ;;  %v203_v18 = vld [vmem:[#allocation7 + $0x228] sm:$0xff] }
 0x2d5   :  { %635 = vmatpush.bf16.msrb.mxu2 %v193_v16  ;;  %v216_v19 = vpack.c.bf16 %v203_v18, %v202_v17 }
 0x2d7   :  { %587 = vmatpush.bf16.msrb.mxu1 %v216_v19 }
 0x2d8   :  { %510 = vmatpush.bf16.msrb.mxu0 %v506_v21  ;;  %v179_v21 = vld [vmem:[#allocation7 + $0x1a8] sm:$0xff] }
 0x2d9   :  { %v192_v22 = vpack.c.bf16 %v179_v21, %v178_v20 }
 0x2db   :  { %636 = vmatpush.bf16.msrb.mxu2 %v192_v22 }
 0x2dc   :  { %511 = vmatpush.bf16.msrb.mxu0 %v505_v24  ;;  %v201_v24 = vld [vmem:[#allocation7 + $0x218] sm:$0xff] }
 0x2dd   :  { %v215_v27 = vpack.c.bf16 %v201_v24, %v200_v23 }
 0x2df   :  { %588 = vmatpush.bf16.msrb.mxu1 %v215_v27 }
 0x2e0   :  { %512 = vmatpush.bf16.msrb.mxu0 %v504_v30  ;;  %v176_v30 = vld [vmem:[#allocation7 + $0x190] sm:$0xff] }
 0x2e4   :  { %513 = vmatpush.bf16.msrb.mxu0 %v503_v37  ;;  %v191_v37 = vpack.c.bf16 %v177_v31, %v176_v30 }
 0x2e6   :  { %637 = vmatpush.bf16.msrb.mxu2 %v191_v37 }
 0x2e8   :  { %514 = vmatpush.bf16.msrb.mxu0 %v502_v45  ;;  %v199_v45 = vld [vmem:[#allocation7 + $0x208] sm:$0xff] }
 0x2e9   :  { %v214_v46 = vpack.c.bf16 %v199_v45, %v198_v39 }
 0x2eb   :  { %589 = vmatpush.bf16.msrb.mxu1 %v214_v46 }
 0x2ec   :  { %515 = vmatpush.bf16.msrb.mxu0 %v501_v50  ;;  %v174_v50 = vld [vmem:[#allocation7 + $0x180] sm:$0xff] }
 0x2ee   :  { %590 = vmatmul.bf16.vlgmr.msrb.gmra.mxu1 %v967_v26 }
 0x2f0   :  { %516 = vmatpush.bf16.msrb.mxu0 %v500_v52  ;;  %v175_v52 = vld [vmem:[#allocation7 + $0x188] sm:$0xff] }
 0x2f1   :  { %v190_v42 = vpack.c.bf16 %v175_v52, %v174_v50 }
 0x2f3   :  { %517 = vmatmul.bf16.vlgmr.msrb.gmra.mxu0 %v991_v8  ;;  %638 = vmatpush.bf16.msrb.mxu2 %v190_v42 }
 0x2fe   :  { %595 = vmatmul.bf16.gmra.mxu1 %v970_v29 }
 0x303   :  { %522 = vmatmul.bf16.gmra.mxu0 %v994_v9 }
 0x30e   :  { %600 = vmatmul.bf16.gmra.mxu1 %v973_v32 }
 0x313   :  { %527 = vmatmul.bf16.gmra.mxu0 %v997_v10 }
 0x31e   :  { %605 = vmatmul.bf16.gmra.mxu1 %v976_v35 }
 0x323   :  { %532 = vmatmul.bf16.gmra.mxu0 %v1000_v11 }
 0x32e   :  { %610 = vmatmul.bf16.gmra.mxu1 %v979_v38 }
 0x333   :  { %537 = vmatmul.bf16.gmra.mxu0 %v1003_v12 }
 0x33e   :  { %615 = vmatmul.bf16.gmra.mxu1 %v982_v41 }
 0x343   :  { %542 = vmatmul.bf16.gmra.mxu0 %v1006_v25 }
 0x34e   :  { %620 = vmatmul.bf16.gmra.mxu1 %v985_v44 }
 0x353   :  { %547 = vmatmul.bf16.gmra.mxu0 %v1009_v57 }
 0x35e   :  { %625 = vmatmul.bf16.gmra.mxu1 %v988_v47 }
 0x363   :  { %552 = vmatmul.bf16.gmra.mxu0 %v1013_v7 }
 0x36b   :  { %v591_v50 = vpop.f32.mrf.mxu1 }
 0x370   :  { %v518_v49 = vpop.f32.mrf.mxu0 }
 0x371   :  { %v519_v43 = vadd.f32 %v518_v49, %v1055_v33 }
 0x373   :  { %v558_v36 = vmax.f32 %v519_v43, 0.0 }
 0x378   :  { %v520_v48 = vpop.f32.mrf.mxu0 }
 0x379   :  { %v521_v28 = vadd.f32 %v520_v48, %v1055_v33 }
 0x37b   :  { %v559_v40 = vmax.f32 %v521_v28, 0.0  ;;  %v593_v28 = vpop.f32.mrf.mxu1 }
 0x37d   :  { %v574_v34 = vpack.c.bf16 %v559_v40, %v558_v36 }
 0x37f   :  { %639 = vmatmul.bf16.vlgmr.msrb.gmra.mxu2 %v574_v34 }
 0x380   :  { %v523_v26 = vpop.f32.mrf.mxu0 }
 0x381   :  { %v524_v15 = vadd.f32 %v523_v26, %v1055_v33 }
 0x383   :  { %v560_v53 = vmax.f32 %v524_v15, 0.0  ;;  %v596_v36 = vpop.f32.mrf.mxu1 }
 0x388   :  { %v525_v51 = vpop.f32.mrf.mxu0 }
 0x389   :  { %v526_v29 = vadd.f32 %v525_v51, %v1055_v33 }
 0x38b   :  { %v561_v54 = vmax.f32 %v526_v29, 0.0  ;;  %v598_v34 = vpop.f32.mrf.mxu1 }
 0x38d   :  { %v575_v55 = vpack.c.bf16 %v561_v54, %v560_v53 }
 0x38f   :  { %644 = vmatmul.bf16.gmra.mxu2 %v575_v55 }
 0x390   :  { %v528_v56 = vpop.f32.mrf.mxu0 }
 0x391   :  { %v529_v58 = vadd.f32 %v528_v56, %v1055_v33 }
 0x393   :  { %v562_v32 = vmax.f32 %v529_v58, 0.0  ;;  %v601_v29 = vpop.f32.mrf.mxu1 }
 0x398   :  { %v530_v59 = vpop.f32.mrf.mxu0 }
 0x399   :  { %v531_v60 = vadd.f32 %v530_v59, %v1055_v33 }
 0x39b   :  { %v563_v61 = vmax.f32 %v531_v60, 0.0  ;;  %v603_v56 = vpop.f32.mrf.mxu1 }
 0x39d   :  { %v576_v62 = vpack.c.bf16 %v563_v61, %v562_v32 }
 0x39f   :  { %649 = vmatmul.bf16.gmra.mxu2 %v576_v62 }
 0x3a0   :  { %v533_v63 = vpop.f32.mrf.mxu0 }
 0x3a1   :  { %v534_v0 = vadd.f32 %v533_v63, %v1055_v33 }
 0x3a3   :  { %v564_v35 = vmax.f32 %v534_v0, 0.0 }
 0x3a8   :  { %v535_v1 = vpop.f32.mrf.mxu0 }
 0x3a9   :  { %v536_v2 = vadd.f32 %v535_v1, %v1055_v33 }
 0x3ab   :  { %v565_v3 = vmax.f32 %v536_v2, 0.0 }
 0x3ad   :  { %v577_v4 = vpack.c.bf16 %v565_v3, %v564_v35 }
 0x3af   :  { %654 = vmatmul.bf16.gmra.mxu2 %v577_v4 }
 0x3b0   :  { %v538_v5 = vpop.f32.mrf.mxu0 }
 0x3b1   :  { %v539_v6 = vadd.f32 %v538_v5, %v1055_v33 }
 0x3b3   :  { %v566_v38 = vmax.f32 %v539_v6, 0.0 }
 0x3b8   :  { %v540_v14 = vpop.f32.mrf.mxu0 }
 0x3b9   :  { %v541_v16 = vadd.f32 %v540_v14, %v1055_v33 }
 0x3bb   :  { %v567_v17 = vmax.f32 %v541_v16, 0.0 }
 0x3bd   :  { %v578_v18 = vpack.c.bf16 %v567_v17, %v566_v38 }
 0x3bf   :  { %659 = vmatmul.bf16.gmra.mxu2 %v578_v18 }
 0x3c0   :  { %v543_v19 = vpop.f32.mrf.mxu0 }
 0x3c1   :  { %v544_v20 = vadd.f32 %v543_v19, %v1055_v33 }
 0x3c3   :  { %v568_v41 = vmax.f32 %v544_v20, 0.0 }
 0x3c8   :  { %v545_v21 = vpop.f32.mrf.mxu0 }
 0x3c9   :  { %v546_v22 = vadd.f32 %v545_v21, %v1055_v33 }
 0x3cb   :  { %v569_v23 = vmax.f32 %v546_v22, 0.0 }
 0x3cd   :  { %v579_v24 = vpack.c.bf16 %v569_v23, %v568_v41 }
 0x3cf   :  { %664 = vmatmul.bf16.gmra.mxu2 %v579_v24 }
 0x3d0   :  { %v548_v27 = vpop.f32.mrf.mxu0 }
 0x3d1   :  { %v549_v30 = vadd.f32 %v548_v27, %v1055_v33 }
 0x3d3   :  { %v570_v44 = vmax.f32 %v549_v30, 0.0 }
 0x3d8   :  { %v550_v31 = vpop.f32.mrf.mxu0 }
 0x3d9   :  { %v551_v37 = vadd.f32 %v550_v31, %v1055_v33 }
 0x3db   :  { %v571_v39 = vmax.f32 %v551_v37, 0.0 }
 0x3dd   :  { %v580_v45 = vpack.c.bf16 %v571_v39, %v570_v44 }
 0x3df   :  { %669 = vmatmul.bf16.gmra.mxu2 %v580_v45 }
 0x3e0   :  { %v553_v46 = vpop.f32.mrf.mxu0 }
 0x3e1   :  { %v554_v52 = vadd.f32 %v553_v46, %v1055_v33 }
 0x3e3   :  { %v572_v43 = vmax.f32 %v554_v52, 0.0 }
 0x3e8   :  { %v555_v42 = vpop.f32.mrf.mxu0 }
 0x3e9   :  { %v556_v49 = vadd.f32 %v555_v42, %v1055_v33  ;;  %v606_v33 = vpop.f32.mrf.mxu1 }
 0x3eb   :  { %v573_v47 = vmax.f32 %v556_v49, 0.0 }
 0x3ed   :  { %v581_v48 = vpack.c.bf16 %v573_v47, %v572_v43 }
 0x3ef   :  { %674 = vmatmul.bf16.gmra.mxu2 %v581_v48 }
 0x3f1   :  { %v608_v63 = vpop.f32.mrf.mxu1 }
 0x3f9   :  { %v611_v3 = vpop.f32.mrf.mxu1 }
 0x401   :  { %v613_v14 = vpop.f32.mrf.mxu1 }
 0x402   :  { %v640_v40 = vpop.f32.mrf.mxu2 }
 0x403   :  { %v641_v26 = vadd.f32 %v640_v40, %v591_v50 }
 0x409   :  { %v616_v17 = vpop.f32.mrf.mxu1 }
 0x40a   :  { %v642_v15 = vpop.f32.mrf.mxu2 }
 0x40b   :  { %v643_v51 = vadd.f32 %v642_v15, %v593_v28  ;;  %v688_v28 = vperm.slane %v1017_v13, 2 }
 0x40d   :  { %v680_v53 = vpack.c.bf16 %v643_v51, %v641_v26 }
 0x411   :  { %v618_v19 = vpop.f32.mrf.mxu1 }
 0x412   :  { %v645_v54 = vpop.f32.mrf.mxu2 }
 0x413   :  { %v646_v55 = vadd.f32 %v645_v54, %v596_v36 }
 0x419   :  { %v621_v22 = vpop.f32.mrf.mxu1 }
 0x41a   :  { %v647_v58 = vpop.f32.mrf.mxu2 }
 0x41b   :  { %v648_v59 = vadd.f32 %v647_v58, %v598_v34 }
 0x41d   :  { %v681_v60 = vpack.c.bf16 %v648_v59, %v646_v55 }
 0x421   :  { %v623_v23 = vpop.f32.mrf.mxu1 }
 0x422   :  { %v650_v32 = vpop.f32.mrf.mxu2 }
 0x423   :  { %v651_v61 = vadd.f32 %v650_v32, %v601_v29 }
 0x429   :  { %v626_v27 = vpop.f32.mrf.mxu1 }
 0x42a   :  { %v652_v62 = vpop.f32.mrf.mxu2 }
 0x42b   :  { %v653_v0 = vadd.f32 %v652_v62, %v603_v56 }
 0x42d   :  { %v682_v1 = vpack.c.bf16 %v653_v0, %v651_v61 }
 0x431   :  { %v628_v31 = vpop.f32.mrf.mxu1 }
 0x432   :  { %v655_v2 = vpop.f32.mrf.mxu2 }
 0x433   :  { %v656_v35 = vadd.f32 %v655_v2, %v606_v33 }
 0x43a   :  { %v657_v4 = vpop.f32.mrf.mxu2 }
 0x43b   :  { %v658_v5 = vadd.f32 %v657_v4, %v608_v63 }
 0x43d   :  { %v683_v6 = vpack.c.bf16 %v658_v5, %v656_v35 }
 0x442   :  { %v660_v16 = vpop.f32.mrf.mxu2 }
 0x443   :  { %v661_v38 = vadd.f32 %v660_v16, %v611_v3 }
 0x44a   :  { %v662_v18 = vpop.f32.mrf.mxu2 }
 0x44b   :  { %v663_v43 = vadd.f32 %v662_v18, %v613_v14 }
 0x44d   :  { %v684_v48 = vpack.c.bf16 %v663_v43, %v661_v38 }
 0x452   :  { %v665_v20 = vpop.f32.mrf.mxu2 }
 0x453   :  { %v666_v49 = vadd.f32 %v665_v20, %v616_v17 }
 0x45a   :  { %v667_v21 = vpop.f32.mrf.mxu2 }
 0x45b   :  { %v668_v52 = vadd.f32 %v667_v21, %v618_v19 }
 0x45d   :  { %v685_v47 = vpack.c.bf16 %v668_v52, %v666_v49 }
 0x462   :  { %v670_v41 = vpop.f32.mrf.mxu2 }
 0x463   :  { %v671_v50 = vadd.f32 %v670_v41, %v621_v22 }
 0x46a   :  { %v672_v24 = vpop.f32.mrf.mxu2 }
 0x46b   :  { %v673_v45 = vadd.f32 %v672_v24, %v623_v23 }
 0x46d   :  { %v686_v42 = vpack.c.bf16 %v673_v45, %v671_v50 }
 0x472   :  { %v675_v30 = vpop.f32.mrf.mxu2 }
 0x473   :  { %v676_v44 = vadd.f32 %v675_v30, %v626_v27 }
 0x47a   :  { %v677_v37 = vpop.f32.mrf.mxu2 }
 0x47b   :  { %v678_v39 = vadd.f32 %v677_v37, %v628_v31 }
 0x47d   :  { %v687_v46 = vpack.c.bf16 %v678_v39, %v676_v44 }
 0x47f   :  { %689 = vmatpush.bf16.msrb.mxu3 %v687_v46 }
 0x483   :  { %690 = vmatpush.bf16.msrb.mxu3 %v686_v42 }
 0x487   :  { %691 = vmatpush.bf16.msrb.mxu3 %v685_v47 }
 0x48b   :  { %692 = vmatpush.bf16.msrb.mxu3 %v684_v48 }
 0x48f   :  { %693 = vmatpush.bf16.msrb.mxu3 %v683_v6 }
 0x493   :  { %694 = vmatpush.bf16.msrb.mxu3 %v682_v1 }
 0x497   :  { %695 = vmatpush.bf16.msrb.mxu3 %v681_v60 }
 0x49b   :  { %696 = vmatpush.bf16.msrb.mxu3 %v680_v53 }
 0x49e   :  { %697 = vmatmul.bf16.vlgmr.msrb.gmra.mxu3 %v991_v8 }
 0x4ae   :  { %702 = vmatmul.bf16.gmra.mxu3 %v994_v9 }
 0x4be   :  { %707 = vmatmul.bf16.gmra.mxu3 %v997_v10 }
 0x4ce   :  { %712 = vmatmul.bf16.gmra.mxu3 %v1000_v11 }
 0x4de   :  { %717 = vmatmul.bf16.gmra.mxu3 %v1003_v12 }
 0x4ee   :  { %722 = vmatmul.bf16.gmra.mxu3 %v1006_v25 }
 0x4fe   :  { %727 = vmatmul.bf16.gmra.mxu3 %v1009_v57 }
 0x50e   :  { %732 = vmatmul.bf16.gmra.mxu3 %v1013_v7 }
 0x521   :  { %v698_v36 = vpop.f32.mrf.mxu3 }
 0x522   :  { %v699_v40 = vadd.f32 %v698_v36, %v688_v28 }
 0x524   :  { %738 = vst [vmem:[#allocation8] sm:$0xff] %v699_v40 }
 0x529   :  { %v700_v8 = vpop.f32.mrf.mxu3 }
 0x52a   :  { %v701_v34 = vadd.f32 %v700_v8, %v688_v28 }
 0x52c   :  { %739 = vst [vmem:[#allocation8 + $0x8] sm:$0xff] %v701_v34 }
 0x531   :  { %v703_v9 = vpop.f32.mrf.mxu3 }
 0x532   :  { %v704_v10 = vadd.f32 %v703_v9, %v688_v28 }
 0x534   :  { %740 = vst [vmem:[#allocation8 + $0x10] sm:$0xff] %v704_v10 }
 0x539   :  { %v705_v11 = vpop.f32.mrf.mxu3 }
 0x53a   :  { %v706_v26 = vadd.f32 %v705_v11, %v688_v28 }
 0x53c   :  { %741 = vst [vmem:[#allocation8 + $0x18] sm:$0xff] %v706_v26 }
 0x541   :  { %v708_v12 = vpop.f32.mrf.mxu3 }
 0x542   :  { %v709_v25 = vadd.f32 %v708_v12, %v688_v28 }
 0x544   :  { %742 = vst [vmem:[#allocation8 + $0x20] sm:$0xff] %v709_v25 }
 0x549   :  { %v710_v57 = vpop.f32.mrf.mxu3 }
 0x54a   :  { %v711_v15 = vadd.f32 %v710_v57, %v688_v28 }
 0x54c   :  { %743 = vst [vmem:[#allocation8 + $0x28] sm:$0xff] %v711_v15 }
 0x551   :  { %v713_v7 = vpop.f32.mrf.mxu3 }
 0x552   :  { %v714_v13 = vadd.f32 %v713_v7, %v688_v28 }
 0x554   :  { %744 = vst [vmem:[#allocation8 + $0x30] sm:$0xff] %v714_v13 }
 0x559   :  { %v715_v51 = vpop.f32.mrf.mxu3 }
 0x55a   :  { %v716_v29 = vadd.f32 %v715_v51, %v688_v28 }
 0x55c   :  { %745 = vst [vmem:[#allocation8 + $0x38] sm:$0xff] %v716_v29 }
 0x561   :  { %v718_v53 = vpop.f32.mrf.mxu3 }
 0x562   :  { %v719_v54 = vadd.f32 %v718_v53, %v688_v28 }
 0x564   :  { %746 = vst [vmem:[#allocation8 + $0x40] sm:$0xff] %v719_v54 }
 0x569   :  { %v720_v55 = vpop.f32.mrf.mxu3 }
 0x56a   :  { %v721_v56 = vadd.f32 %v720_v55, %v688_v28 }
 0x56c   :  { %747 = vst [vmem:[#allocation8 + $0x48] sm:$0xff] %v721_v56 }
 0x571   :  { %v723_v58 = vpop.f32.mrf.mxu3 }
 0x572   :  { %v724_v59 = vadd.f32 %v723_v58, %v688_v28 }
 0x574   :  { %748 = vst [vmem:[#allocation8 + $0x50] sm:$0xff] %v724_v59 }
 0x579   :  { %v725_v60 = vpop.f32.mrf.mxu3 }
 0x57a   :  { %v726_v33 = vadd.f32 %v725_v60, %v688_v28 }
 0x57c   :  { %749 = vst [vmem:[#allocation8 + $0x58] sm:$0xff] %v726_v33 }
 0x581   :  { %v728_v32 = vpop.f32.mrf.mxu3 }
 0x582   :  { %v729_v61 = vadd.f32 %v728_v32, %v688_v28 }
 0x584   :  { %750 = vst [vmem:[#allocation8 + $0x60] sm:$0xff] %v729_v61 }
 0x589   :  { %v730_v62 = vpop.f32.mrf.mxu3 }
 0x58a   :  { %v731_v63 = vadd.f32 %v730_v62, %v688_v28 }
 0x58c   :  { %751 = vst [vmem:[#allocation8 + $0x68] sm:$0xff] %v731_v63 }
 0x591   :  { %v733_v0 = vpop.f32.mrf.mxu3 }
 0x592   :  { %v734_v1 = vadd.f32 %v733_v0, %v688_v28 }
 0x594   :  { %752 = vst [vmem:[#allocation8 + $0x70] sm:$0xff] %v734_v1 }
 0x599   :  { %v735_v2 = vpop.f32.mrf.mxu3 }
 0x59a   :  { %v736_v35 = vadd.f32 %v735_v2, %v688_v28 }
 0x59c   :  { %753 = vst [vmem:[#allocation8 + $0x78] sm:$0xff] %v736_v35 }
 0x59d   :  { %766 = dma.vmem_to_hbm [thread:$0]  %s759_s29, 2048, %s761_s5, [#allocation4], %s925_s20, %s925_s20, %s926_s21  }
 0x59e   :  { %922 = dma.done.wait [#allocation4], 2048  }
 0x59f   :  { %923 = vsyncadd [#allocation4], 4294965248 }
 0x5a0   :  { %771 = vsyncpa [#allocation3], 1 }
 0x5a1   :  { %772 = vsyncpa [#allocation6], 1 }
 0x5a2   :  { %773 = vsyncpa [#allocation4], 1 }

</bundles_post_ra>
